<compile_context>
chip_gen: v7x
topology: tpu7x:2x2x1
jax: 0.10.0
libtpu: 0.0.40
codegen_flags: <defaults>
</compile_context>

<pallas_src>
import jax
import jax.numpy as jnp
from jax.experimental import pallas as pl
from jax.experimental.pallas import tpu as pltpu

N_LAYER = 5
OUTPUT_SIZE = 512       # flattened feature size of the base
EMBED_SIZE = 128
EPS = 1e-12             # F.normalize clamp_min eps


def _round_up(n, m):
    return ((n + m - 1) // m) * m


def sum_linear_kernel(feat_ref, wcat_ref, bcat_ref, out_ref):
    """Fused forward for one batch tile.

    feat_ref : VMEM (TB, OUTPUT_SIZE) bf16              flattened base features
    wcat_ref : VMEM (OUTPUT_SIZE, N_LAYER*EMBED_SIZE) bf16   all layer weights (out-dim concat)
    bcat_ref : VMEM (1, N_LAYER*EMBED_SIZE) f32         all layer biases, concatenated
    out_ref  : VMEM (TB, EMBED_SIZE) f32
    """
    # One MXU pass for all 5 layers: (TB,512)bf16 @ (512,640)bf16 -> (TB,640) f32 acc.
    y = jnp.dot(feat_ref[...], wcat_ref[...], preferred_element_type=jnp.float32)
    y = y + bcat_ref[...]                                           # broadcast bias (1, 640), f32

    acc = None
    for i in range(N_LAYER):                                        # static unroll
        yi = y[:, i * EMBED_SIZE:(i + 1) * EMBED_SIZE]              # free 128-boundary lane slice
        # F.normalize(yi, p=2, dim=1): yi / max(||yi||_2, eps)
        #   max(sqrt(s), eps) == sqrt(max(s, eps^2))  ->  rsqrt on the EUP, multiply on the VPU.
        sumsq = jnp.sum(yi * yi, axis=1, keepdims=True)             # (TB, 1)
        inv = jax.lax.rsqrt(jnp.maximum(sumsq, EPS * EPS))
        term = yi * inv
        acc = term if acc is None else acc + term                   # init with layer-0 term
    out_ref[...] = acc.astype(out_ref.dtype)


def sum_linear_embedding(x, W, b):
    """x: (B, C, H, W) with C*H*W == OUTPUT_SIZE.
    W: (N_LAYER, OUTPUT_SIZE, EMBED_SIZE)  (per-layer, laid out as feat @ W[i] + b[i]).
    b: (N_LAYER, EMBED_SIZE).  Returns (B, EMBED_SIZE) float32."""
    B = x.shape[0]
    # TODO(synk): the arbitrary `base` backbone is not part of this module's own
    # compute; an identity/flatten stand-in is used here.
    feat = x.reshape(B, -1).astype(jnp.bfloat16)                    # bf16 MXU operand
    assert feat.shape[1] == OUTPUT_SIZE

    # Fuse all layer weights into one (512, 640) bf16 matrix / (1, 640) f32 bias.
    wcat = jnp.transpose(W, (1, 0, 2)).reshape(OUTPUT_SIZE, N_LAYER * EMBED_SIZE)
    wcat = wcat.astype(jnp.bfloat16)
    bcat = b.reshape(1, N_LAYER * EMBED_SIZE).astype(jnp.float32)

    # Pad the batch only up to a multiple of 8 (full sublanes, unmasked vst).
    B8 = _round_up(B, 8)
    if B8 != B:
        feat = jnp.pad(feat, ((0, B8 - B), (0, 0)))

    # Tile selection:
    #   * tiny batch -> single full-batch tile
    #   * otherwise  -> 512-1024-row tiles with >= 2 grid steps (v7x: one per TC),
    #     ragged last tile handled by the cdiv grid (masked writes), no big pad copy.
    if B8 <= 64:
        TB = B8
    else:
        TB = min(1024, _round_up(pl.cdiv(B8, 2), 8))
    grid = pl.cdiv(B8, TB)

    out = pl.pallas_call(
        sum_linear_kernel,
        out_shape=jax.ShapeDtypeStruct((B8, EMBED_SIZE), jnp.float32),
        grid=(grid,),
        in_specs=[
            pl.BlockSpec((TB, OUTPUT_SIZE), lambda i: (i, 0)),                      # feat tile (streamed)
            pl.BlockSpec((OUTPUT_SIZE, N_LAYER * EMBED_SIZE), lambda i: (0, 0)),    # weights, VMEM-resident
            pl.BlockSpec((1, N_LAYER * EMBED_SIZE), lambda i: (0, 0)),              # bias, VMEM-resident
        ],
        out_specs=pl.BlockSpec((TB, EMBED_SIZE), lambda i: (i, 0)),
        compiler_params=pltpu.CompilerParams(dimension_semantics=("parallel",)),
    )(feat, wcat, bcat)

    return out[:B]


def sum_linear_embedding_ref(x, W, b):
    """Pure-JAX f32 reference mirroring the PyTorch forward."""
    feat = x.reshape(x.shape[0], -1).astype(jnp.float32)
    embeds = []
    for i in range(N_LAYER):
        y = feat @ W[i] + b[i]
        nrm = jnp.sqrt(jnp.sum(y * y, axis=1, keepdims=True))
        embeds.append(y / jnp.maximum(nrm, EPS))
    return jnp.sum(jnp.stack(embeds, axis=0), axis=0)               # (B, E)


if __name__ == "__main__":
    key = jax.random.PRNGKey(0)
    kx, kw, kb = jax.random.split(key, 3)

    # small shapes: B=2, C=2, H=W=16  ->  C*H*W = 512 = output_size
    B, C, H, Wd = 2, 2, 16, 16
    x = jax.random.normal(kx, (B, C, H, Wd), dtype=jnp.float32)

    # Linear params (deterministic init, ~PyTorch-like scale), stored as
    # (in_features, out_features) so the math is feat @ W[i] + b[i].
    bound = 1.0 / jnp.sqrt(OUTPUT_SIZE)
    W = jax.random.uniform(kw, (N_LAYER, OUTPUT_SIZE, EMBED_SIZE),
                           minval=-bound, maxval=bound, dtype=jnp.float32)
    b = jax.random.uniform(kb, (N_LAYER, EMBED_SIZE),
                           minval=-bound, maxval=bound, dtype=jnp.float32)

    out = sum_linear_embedding(x, W, b)
    out = jax.block_until_ready(out)

    ref = sum_linear_embedding_ref(x, W, b)
    assert out.shape == (B, EMBED_SIZE)
    # bf16 MXU operands (f32 accumulate): observed error is O(1e-3); 2e-2 is ample headroom.
    assert jnp.allclose(out, ref, atol=2e-2, rtol=2e-2), "mismatch vs reference"

    print("KERNEL_OK")
</pallas_src>

<mosaic_0001>
module attributes {stable_mosaic.version = 11 : i64} {
  func.func @sum_linear_kernel(%arg0: i32, %arg1: memref<8x512xbf16, #tpu.memory_space<vmem>>, %arg2: memref<512x640xbf16, #tpu.memory_space<vmem>>, %arg3: memref<1x640xf32, #tpu.memory_space<vmem>>, %arg4: memref<8x128xf32, #tpu.memory_space<vmem>>) attributes {dimension_semantics = [#tpu.dimension_semantics<parallel>], iteration_bounds = array<i64: 1>, scalar_prefetch = 0 : i64, scratch_operands = 0 : i64, tpu.core_type = #tpu.core_type<tc>, window_params = [{transform_indices = @transform_0, window_bounds = array<i64: 8, 512>}, {pipeline_mode = #tpu.pipeline_mode<synchronous>, transform_indices = @transform_1, window_bounds = array<i64: 512, 640>}, {pipeline_mode = #tpu.pipeline_mode<synchronous>, transform_indices = @transform_2, window_bounds = array<i64: 1, 640>}, {transform_indices = @transform_3, window_bounds = array<i64: 8, 128>}]} {
    %c0 = arith.constant 0 : index
    %c0_0 = arith.constant 0 : index
    %0 = vector.load %arg1[%c0, %c0_0] : memref<8x512xbf16, #tpu.memory_space<vmem>>, vector<8x512xbf16>
    %c0_1 = arith.constant 0 : index
    %c0_2 = arith.constant 0 : index
    %1 = vector.load %arg2[%c0_1, %c0_2] : memref<512x640xbf16, #tpu.memory_space<vmem>>, vector<512x640xbf16>
    %cst = arith.constant dense<0.000000e+00> : vector<8x640xf32>
    %2 = tpu.matmul %0, %1, %cst {dimension_numbers = #tpu.dot_dimension_numbers<[1], [0], [0], [1], [0, 0, 1, 1], [], []>} : vector<8x512xbf16>, vector<512x640xbf16>, vector<8x640xf32> -> vector<8x640xf32>
    %c0_3 = arith.constant 0 : index
    %c0_4 = arith.constant 0 : index
    %3 = vector.load %arg3[%c0_3, %c0_4] : memref<1x640xf32, #tpu.memory_space<vmem>>, vector<1x640xf32>
    %4 = vector.broadcast %3 : vector<1x640xf32> to vector<8x640xf32>
    %5 = arith.addf %2, %4 : vector<8x640xf32>
    %6 = vector.extract_strided_slice %5 {offsets = [0, 0], sizes = [8, 128], strides = [1, 1]} : vector<8x640xf32> to vector<8x128xf32>
    %7 = arith.mulf %6, %6 : vector<8x128xf32>
    %cst_5 = arith.constant dense<0.000000e+00> : vector<8xf32>
    %8 = vector.multi_reduction <add>, %7, %cst_5 [1] : vector<8x128xf32> to vector<8xf32>
    %9 = vector.shape_cast %8 : vector<8xf32> to vector<8x1xf32>
    %cst_6 = arith.constant 1.000000e-24 : f32
    %10 = vector.broadcast %cst_6 : f32 to vector<8x1xf32>
    %11 = arith.maximumf %9, %10 : vector<8x1xf32>
    %12 = math.rsqrt %11 : vector<8x1xf32>
    %13 = vector.broadcast %12 : vector<8x1xf32> to vector<8x128xf32>
    %14 = arith.mulf %6, %13 : vector<8x128xf32>
    %15 = vector.extract_strided_slice %5 {offsets = [0, 128], sizes = [8, 128], strides = [1, 1]} : vector<8x640xf32> to vector<8x128xf32>
    %16 = arith.mulf %15, %15 : vector<8x128xf32>
    %cst_7 = arith.constant dense<0.000000e+00> : vector<8xf32>
    %17 = vector.multi_reduction <add>, %16, %cst_7 [1] : vector<8x128xf32> to vector<8xf32>
    %18 = vector.shape_cast %17 : vector<8xf32> to vector<8x1xf32>
    %cst_8 = arith.constant 1.000000e-24 : f32
    %19 = vector.broadcast %cst_8 : f32 to vector<8x1xf32>
    %20 = arith.maximumf %18, %19 : vector<8x1xf32>
    %21 = math.rsqrt %20 : vector<8x1xf32>
    %22 = vector.broadcast %21 : vector<8x1xf32> to vector<8x128xf32>
    %23 = arith.mulf %15, %22 : vector<8x128xf32>
    %24 = arith.addf %14, %23 : vector<8x128xf32>
    %25 = vector.extract_strided_slice %5 {offsets = [0, 256], sizes = [8, 128], strides = [1, 1]} : vector<8x640xf32> to vector<8x128xf32>
    %26 = arith.mulf %25, %25 : vector<8x128xf32>
    %cst_9 = arith.constant dense<0.000000e+00> : vector<8xf32>
    %27 = vector.multi_reduction <add>, %26, %cst_9 [1] : vector<8x128xf32> to vector<8xf32>
    %28 = vector.shape_cast %27 : vector<8xf32> to vector<8x1xf32>
    %cst_10 = arith.constant 1.000000e-24 : f32
    %29 = vector.broadcast %cst_10 : f32 to vector<8x1xf32>
    %30 = arith.maximumf %28, %29 : vector<8x1xf32>
    %31 = math.rsqrt %30 : vector<8x1xf32>
    %32 = vector.broadcast %31 : vector<8x1xf32> to vector<8x128xf32>
    %33 = arith.mulf %25, %32 : vector<8x128xf32>
    %34 = arith.addf %24, %33 : vector<8x128xf32>
    %35 = vector.extract_strided_slice %5 {offsets = [0, 384], sizes = [8, 128], strides = [1, 1]} : vector<8x640xf32> to vector<8x128xf32>
    %36 = arith.mulf %35, %35 : vector<8x128xf32>
    %cst_11 = arith.constant dense<0.000000e+00> : vector<8xf32>
    %37 = vector.multi_reduction <add>, %36, %cst_11 [1] : vector<8x128xf32> to vector<8xf32>
    %38 = vector.shape_cast %37 : vector<8xf32> to vector<8x1xf32>
    %cst_12 = arith.constant 1.000000e-24 : f32
    %39 = vector.broadcast %cst_12 : f32 to vector<8x1xf32>
    %40 = arith.maximumf %38, %39 : vector<8x1xf32>
    %41 = math.rsqrt %40 : vector<8x1xf32>
    %42 = vector.broadcast %41 : vector<8x1xf32> to vector<8x128xf32>
    %43 = arith.mulf %35, %42 : vector<8x128xf32>
    %44 = arith.addf %34, %43 : vector<8x128xf32>
    %45 = vector.extract_strided_slice %5 {offsets = [0, 512], sizes = [8, 128], strides = [1, 1]} : vector<8x640xf32> to vector<8x128xf32>
    %46 = arith.mulf %45, %45 : vector<8x128xf32>
    %cst_13 = arith.constant dense<0.000000e+00> : vector<8xf32>
    %47 = vector.multi_reduction <add>, %46, %cst_13 [1] : vector<8x128xf32> to vector<8xf32>
    %48 = vector.shape_cast %47 : vector<8xf32> to vector<8x1xf32>
    %cst_14 = arith.constant 1.000000e-24 : f32
    %49 = vector.broadcast %cst_14 : f32 to vector<8x1xf32>
    %50 = arith.maximumf %48, %49 : vector<8x1xf32>
    %51 = math.rsqrt %50 : vector<8x1xf32>
    %52 = vector.broadcast %51 : vector<8x1xf32> to vector<8x128xf32>
    %53 = arith.mulf %45, %52 : vector<8x128xf32>
    %54 = arith.addf %44, %53 : vector<8x128xf32>
    %c0_15 = arith.constant 0 : index
    %c0_16 = arith.constant 0 : index
    %55 = vector.load %arg4[%c0_15, %c0_16] : memref<8x128xf32, #tpu.memory_space<vmem>>, vector<8x128xf32>
    tpu.vector_store %arg4[%c0_15, %c0_16], %54 {strides = array<i32>} : memref<8x128xf32, #tpu.memory_space<vmem>>, vector<8x128xf32>,
    return
  }
  func.func @transform_0(%arg0: i32) -> (i32, i32) {
    %c0_i32 = arith.constant 0 : i32
    %c0_i32_0 = arith.constant 0 : i32
    return %arg0, %c0_i32 : i32, i32
  }
  func.func @transform_1(%arg0: i32) -> (i32, i32) {
    %c0_i32 = arith.constant 0 : i32
    %c0_i32_0 = arith.constant 0 : i32
    %c0_i32_1 = arith.constant 0 : i32
    return %c0_i32, %c0_i32_0 : i32, i32
  }
  func.func @transform_2(%arg0: i32) -> (i32, i32) {
    %c0_i32 = arith.constant 0 : i32
    %c0_i32_0 = arith.constant 0 : i32
    %c0_i32_1 = arith.constant 0 : i32
    return %c0_i32, %c0_i32_0 : i32, i32
  }
  func.func @transform_3(%arg0: i32) -> (i32, i32) {
    %c0_i32 = arith.constant 0 : i32
    %c0_i32_0 = arith.constant 0 : i32
    return %arg0, %c0_i32 : i32, i32
  }
}

</mosaic_0001>

<bundles_post_ra>
// kernel: tpu_custom_call.1
= control target key start
LH: loop header
LB: loop body
LE: loop exit
PB: predicated region body
PF: predicated region fallthrough
CT: control target
= control target key end

     0   :  { %8 = vsyncpa [#allocation3], 0  ;;  %s2036_s0 = inlined_call_operand.hbm [shape: bf16[8,512], index: 0, kind: input, shape index: {}]   ;;  %s2037_s1 = inlined_call_operand.hbm [shape: bf16[512,640], index: 1, kind: input, shape index: {}]   ;;  %s2038_s2 = inlined_call_operand.vmem [shape: f32[1,640], index: 2, kind: input, shape index: {}]   ;;  %s2039_s3 = inlined_call_operand.hbm [shape: f32[8,128], index: 3, kind: output, shape index: {}]  }
   0x1   :  { %9 = vsyncpa [#allocation6], 0 }
   0x2   :  { %10 = vsyncpa [#allocation4], 0  ;;  %s1939_s12 = smov [#allocation2]   ;;  %s1940_s14 = smov [#allocation5]  }
   0x3   :  { %s17_s13 = sshll.u32 %s1939_s12, 4  ;;  %s26_s15 = sshll.u32 %s1940_s14, 4  ;;  %s18_s13 = int_to_ptr.vmem [resolvable:$true] %s17_s13  ;;  %s1964_s15 = int_to_ptr.vmem [resolvable:$true] %s26_s15 }
   0x4   :  { %s1867_s18 = scalar_lea.hbm %s2036_s0, 256 }
   0x5   :  { %p1868_p0 = scmp.ne.s32.totalorder %s2036_s0, %s1867_s18  ;;  %p1871_p1 = scmp.lt.u32.totalorder %s1867_s18, %s2036_s0 }
   0x7   :  { %p1873_p2 = pnand %p1871_p1, %p1868_p0 }
   0x9   :  { %1876 = shalt.err (!%p1873_p2)
}
   0xa   :  { %s1877_s23 = scalar_lea.vmem %s18_s13, 256  ;;  %p1882_p4 = scmp.lt.s32.totalorder %s18_s13, %s18_s13 }
   0xb   :  { %p1878_p3 = scmp.ne.s32.totalorder %s18_s13, %s1877_s23  ;;  %p1883_p5 = scmp.lt.s32.totalorder %s1877_s23, %s1877_s23 }
   0xd   :  { %p1884_p6 = por %p1883_p5, %p1882_p4 }
   0xf   :  { %p1885_p7 = pnand %p1884_p6, %p1878_p3 }
  0x11   :  { %1888 = shalt.err (!%p1885_p7)
}
  0x12   :  { %20 = dma.hbm_to_vmem [thread:$0]  %s2036_s0, 256, %s18_s13, [#allocation3]  }
  0x13   :  { %s1889_s28 = scalar_lea.hbm %s2037_s1, 20480 }
  0x14   :  { %p1890_p8 = scmp.ne.s32.totalorder %s2037_s1, %s1889_s28  ;;  %p1893_p9 = scmp.lt.u32.totalorder %s1889_s28, %s2037_s1 }
  0x16   :  { %p1895_p10 = pnand %p1893_p9, %p1890_p8 }
  0x18   :  { %1898 = shalt.err (!%p1895_p10)
}
  0x19   :  { %s1899_s6 = scalar_lea.vmem %s1964_s15, 20480  ;;  %p1904_p12 = scmp.lt.s32.totalorder %s1964_s15, %s1964_s15 }
  0x1a   :  { %p1900_p11 = scmp.ne.s32.totalorder %s1964_s15, %s1899_s6  ;;  %p1905_p13 = scmp.lt.s32.totalorder %s1899_s6, %s1899_s6 }
  0x1c   :  { %p1906_p0 = por %p1905_p13, %p1904_p12 }
  0x1e   :  { %p1907_p1 = pnand %p1906_p0, %p1900_p11 }
  0x20   :  { %1910 = shalt.err (!%p1907_p1)
}
  0x21   :  { %s1941_s0 = smov 320   ;;  %s1942_s7 = smov 20  }
  0x22   :  { %32 = dma.hbm_to_vmem [thread:$0]  %s2037_s1, 20480, %s1964_s15, [#allocation6], %s1941_s0, %s1941_s0, %s1942_s7  }
  0x23   :  { %1933 = dma.done.wait [#allocation3], 256  }
  0x24   :  { %1934 = vsyncadd [#allocation3], 4294967040 }
  0x25   :  { %1935 = dma.done.wait [#allocation6], 20480  }
  0x26   :  { %1936 = vsyncadd [#allocation6], 4294946816  ;;  %v1629_v0 = vld [vmem:[#allocation5 + $0x4] ss:$20 sps:$4 sm:$0xff]   ;;  %v1631_v1 = vld [vmem:[#allocation5 + $0xc] ss:$20 sps:$4 sm:$0xff]  }
  0x27   :  { %1109 = vmatprep.subr.bf16.mxu0 %v1629_v0  ;;  %v1633_v2 = vld [vmem:[#allocation5] ss:$20 sps:$4 sm:$0xff]   ;;  %v1634_v3 = vld [vmem:[#allocation5 + $0x8] ss:$20 sps:$4 sm:$0xff]   ;;  %1191 = vmatprep.subr.bf16.mxu1 %v1631_v1  ;;  %v1640_v7 = vld [vmem:[#allocation5 + $0x30] ss:$20 sps:$4 sm:$0xff]  }
  0x28   :  { %v1635_v4 = vld [vmem:[#allocation5 + $0x2c] ss:$20 sps:$4 sm:$0xff]   ;;  %1110 = vmatpush1.bf16.msra.mxu0 %v1633_v2  ;;  %1192 = vmatpush1.bf16.msra.mxu1 %v1634_v3  ;;  %v1637_v5 = vld [vmem:[#allocation5 + $0x34] ss:$20 sps:$4 sm:$0xff]   ;;  %v1643_v9 = vld [vmem:[#allocation5 + $0x5c] ss:$20 sps:$4 sm:$0xff]  }
  0x29   :  { %v1639_v6 = vld [vmem:[#allocation5 + $0x28] ss:$20 sps:$4 sm:$0xff]   ;;  %1111 = vmatprep.subr.bf16.mxu0 %v1635_v4  ;;  %1193 = vmatprep.subr.bf16.mxu1 %v1637_v5  ;;  %v1645_v10 = vld [vmem:[#allocation5 + $0x50] ss:$20 sps:$4 sm:$0xff]   ;;  %v1646_v11 = vld [vmem:[#allocation5 + $0x58] ss:$20 sps:$4 sm:$0xff]  }
  0x2a   :  { %v1641_v8 = vld [vmem:[#allocation5 + $0x54] ss:$20 sps:$4 sm:$0xff]   ;;  %v1647_v12 = vld [vmem:[#allocation5 + $0x7c] ss:$20 sps:$4 sm:$0xff]   ;;  %v1649_v13 = vld [vmem:[#allocation5 + $0x84] ss:$20 sps:$4 sm:$0xff]  }
  0x2b   :  { %v1651_v14 = vld [vmem:[#allocation5 + $0x78] ss:$20 sps:$4 sm:$0xff]   ;;  %v1652_v15 = vld [vmem:[#allocation5 + $0x80] ss:$20 sps:$4 sm:$0xff]   ;;  %v1658_v19 = vld [vmem:[#allocation5 + $0xa8] ss:$20 sps:$4 sm:$0xff]  }
  0x2c   :  { %1112 = vmatpush1.bf16.msra.mxu0 %v1639_v6  ;;  %1194 = vmatpush1.bf16.msra.mxu1 %v1640_v7  ;;  %v1653_v16 = vld [vmem:[#allocation5 + $0xa4] ss:$20 sps:$4 sm:$0xff]   ;;  %v1655_v17 = vld [vmem:[#allocation5 + $0xac] ss:$20 sps:$4 sm:$0xff]   ;;  %v1661_v21 = vld [vmem:[#allocation5 + $0xd4] ss:$20 sps:$4 sm:$0xff]  }
  0x2d   :  { %1113 = vmatprep.subr.bf16.mxu0 %v1641_v8  ;;  %1195 = vmatprep.subr.bf16.mxu1 %v1643_v9  ;;  %v1657_v18 = vld [vmem:[#allocation5 + $0xa0] ss:$20 sps:$4 sm:$0xff]   ;;  %v1663_v22 = vld [vmem:[#allocation5 + $0xc8] ss:$20 sps:$4 sm:$0xff]   ;;  %v1664_v23 = vld [vmem:[#allocation5 + $0xd0] ss:$20 sps:$4 sm:$0xff]  }
  0x2e   :  { %v1659_v20 = vld [vmem:[#allocation5 + $0xcc] ss:$20 sps:$4 sm:$0xff]   ;;  %v1665_v24 = vld [vmem:[#allocation5 + $0xf4] ss:$20 sps:$4 sm:$0xff]   ;;  %v1667_v25 = vld [vmem:[#allocation5 + $0xfc] ss:$20 sps:$4 sm:$0xff]  }
  0x2f   :  { %v1669_v26 = vld [vmem:[#allocation5 + $0xf0] ss:$20 sps:$4 sm:$0xff]   ;;  %v1670_v27 = vld [vmem:[#allocation5 + $0xf8] ss:$20 sps:$4 sm:$0xff]   ;;  %v1676_v31 = vld [vmem:[#allocation5 + $0x120] ss:$20 sps:$4 sm:$0xff]  }
  0x30   :  { %1114 = vmatpush1.bf16.msra.mxu0 %v1645_v10  ;;  %1196 = vmatpush1.bf16.msra.mxu1 %v1646_v11  ;;  %v1671_v28 = vld [vmem:[#allocation5 + $0x11c] ss:$20 sps:$4 sm:$0xff]   ;;  %v1673_v29 = vld [vmem:[#allocation5 + $0x124] ss:$20 sps:$4 sm:$0xff]   ;;  %v1679_v33 = vld [vmem:[#allocation5 + $0x14c] ss:$20 sps:$4 sm:$0xff]  }
  0x31   :  { %1115 = vmatprep.subr.bf16.mxu0 %v1647_v12  ;;  %1197 = vmatprep.subr.bf16.mxu1 %v1649_v13  ;;  %v1675_v30 = vld [vmem:[#allocation5 + $0x118] ss:$20 sps:$4 sm:$0xff]   ;;  %v1681_v34 = vld [vmem:[#allocation5 + $0x140] ss:$20 sps:$4 sm:$0xff]   ;;  %v1682_v35 = vld [vmem:[#allocation5 + $0x148] ss:$20 sps:$4 sm:$0xff]  }
  0x32   :  { %v1677_v32 = vld [vmem:[#allocation5 + $0x144] ss:$20 sps:$4 sm:$0xff]   ;;  %v1683_v36 = vld [vmem:[#allocation5 + $0x16c] ss:$20 sps:$4 sm:$0xff]   ;;  %v1685_v37 = vld [vmem:[#allocation5 + $0x174] ss:$20 sps:$4 sm:$0xff]  }
  0x33   :  { %v1687_v38 = vld [vmem:[#allocation5 + $0x168] ss:$20 sps:$4 sm:$0xff]   ;;  %v1688_v39 = vld [vmem:[#allocation5 + $0x170] ss:$20 sps:$4 sm:$0xff]   ;;  %v1694_v43 = vld [vmem:[#allocation5 + $0x198] ss:$20 sps:$4 sm:$0xff]  }
  0x34   :  { %1116 = vmatpush1.bf16.msra.mxu0 %v1651_v14  ;;  %1198 = vmatpush1.bf16.msra.mxu1 %v1652_v15  ;;  %v1689_v40 = vld [vmem:[#allocation5 + $0x194] ss:$20 sps:$4 sm:$0xff]   ;;  %v1691_v41 = vld [vmem:[#allocation5 + $0x19c] ss:$20 sps:$4 sm:$0xff]   ;;  %v1697_v45 = vld [vmem:[#allocation5 + $0x1c4] ss:$20 sps:$4 sm:$0xff]  }
  0x35   :  { %1117 = vmatprep.subr.bf16.mxu0 %v1653_v16  ;;  %1199 = vmatprep.subr.bf16.mxu1 %v1655_v17  ;;  %v1693_v42 = vld [vmem:[#allocation5 + $0x190] ss:$20 sps:$4 sm:$0xff]   ;;  %v1699_v47 = vld [vmem:[#allocation5 + $0x1b8] ss:$20 sps:$4 sm:$0xff]   ;;  %v1700_v49 = vld [vmem:[#allocation5 + $0x1c0] ss:$20 sps:$4 sm:$0xff]  }
  0x36   :  { %v1695_v44 = vld [vmem:[#allocation5 + $0x1bc] ss:$20 sps:$4 sm:$0xff]   ;;  %v1701_v50 = vld [vmem:[#allocation5 + $0x1e4] ss:$20 sps:$4 sm:$0xff]   ;;  %v1703_v51 = vld [vmem:[#allocation5 + $0x1ec] ss:$20 sps:$4 sm:$0xff]  }
  0x37   :  { %v42_v46 = vld [vmem:[#allocation2] sm:$0xff]  ;;  %v1706_v53 = vld [vmem:[#allocation5 + $0x1e8] ss:$20 sps:$4 sm:$0xff]   ;;  %v1707_v54 = vld [vmem:[#allocation5 + $0x20c] ss:$20 sps:$4 sm:$0xff]  }
  0x38   :  { %1118 = vmatpush1.bf16.msra.mxu0 %v1657_v18  ;;  %1200 = vmatpush1.bf16.msra.mxu1 %v1658_v19  ;;  %v1995_v48 = vcombine.high %v42_v46, %v42_v46  ;;  %v1705_v52 = vld [vmem:[#allocation5 + $0x1e0] ss:$20 sps:$4 sm:$0xff]   ;;  %v1711_v56 = vld [vmem:[#allocation5 + $0x208] ss:$20 sps:$4 sm:$0xff]   ;;  %v1712_v57 = vld [vmem:[#allocation5 + $0x210] ss:$20 sps:$4 sm:$0xff]   ;;  %v1999_v5 = vcombine.low %v42_v46, %v42_v46 }
  0x39   :  { %1119 = vmatprep.subr.bf16.mxu0 %v1659_v20  ;;  %1201 = vmatprep.subr.bf16.mxu1 %v1661_v21  ;;  %v1709_v55 = vld [vmem:[#allocation5 + $0x214] ss:$20 sps:$4 sm:$0xff]   ;;  %v1715_v59 = vld [vmem:[#allocation5 + $0x23c] ss:$20 sps:$4 sm:$0xff]   ;;  %v1718_v61 = vld [vmem:[#allocation5 + $0x238] ss:$20 sps:$4 sm:$0xff]  }
  0x3a   :  { %1141 = vmatprep.mubr.bf16.mxu0 %v1995_v48  ;;  %1223 = vmatprep.mubr.bf16.mxu1 %v1995_v48  ;;  %v1713_v58 = vld [vmem:[#allocation5 + $0x234] ss:$20 sps:$4 sm:$0xff]   ;;  %v1717_v60 = vld [vmem:[#allocation5 + $0x230] ss:$20 sps:$4 sm:$0xff]   ;;  %v1723_v0 = vld [vmem:[#allocation5 + $0x258] ss:$20 sps:$4 sm:$0xff]  }
  0x3b   :  { %v1719_v62 = vld [vmem:[#allocation5 + $0x25c] ss:$20 sps:$4 sm:$0xff]   ;;  %v1721_v63 = vld [vmem:[#allocation5 + $0x264] ss:$20 sps:$4 sm:$0xff]   ;;  %v1724_v1 = vld [vmem:[#allocation5 + $0x260] ss:$20 sps:$4 sm:$0xff]  }
  0x3c   :  { %1120 = vmatpush1.bf16.msra.mxu0 %v1663_v22  ;;  %1202 = vmatpush1.bf16.msra.mxu1 %v1664_v23  ;;  %v1728_v2 = vld [vmem:[#allocation5 + $0x284] ss:$20 sps:$4 sm:$0xff]   ;;  %v1731_v3 = vld [vmem:[#allocation5 + $0x28c] ss:$20 sps:$4 sm:$0xff]   ;;  %v1729_v6 = vld [vmem:[#allocation5 + $0x288] ss:$20 sps:$4 sm:$0xff]  }
  0x3d   :  { %1121 = vmatprep.subr.bf16.mxu0 %v1665_v24  ;;  %1203 = vmatprep.subr.bf16.mxu1 %v1667_v25  ;;  %v1726_v4 = vld [vmem:[#allocation5 + $0x280] ss:$20 sps:$4 sm:$0xff]   ;;  %v1733_v9 = vld [vmem:[#allocation5 + $0x2a8] ss:$20 sps:$4 sm:$0xff]   ;;  %v1736_v10 = vld [vmem:[#allocation5 + $0x2b0] ss:$20 sps:$4 sm:$0xff]  }
  0x3e   :  { %v1735_v7 = vld [vmem:[#allocation5 + $0x2ac] ss:$20 sps:$4 sm:$0xff]   ;;  %v1738_v8 = vld [vmem:[#allocation5 + $0x2b4] ss:$20 sps:$4 sm:$0xff]   ;;  %v1744_v12 = vld [vmem:[#allocation5 + $0x2dc] ss:$20 sps:$4 sm:$0xff]  }
  0x3f   :  { %v1741_v11 = vld [vmem:[#allocation5 + $0x2d4] ss:$20 sps:$4 sm:$0xff]   ;;  %v1739_v13 = vld [vmem:[#allocation5 + $0x2d0] ss:$20 sps:$4 sm:$0xff]   ;;  %v1742_v14 = vld [vmem:[#allocation5 + $0x2d8] ss:$20 sps:$4 sm:$0xff]  }
  0x40   :  { %1122 = vmatpush1.bf16.msra.mxu0 %v1669_v26  ;;  %1204 = vmatpush1.bf16.msra.mxu1 %v1670_v27  ;;  %v1747_v15 = vld [vmem:[#allocation5 + $0x2fc] ss:$20 sps:$4 sm:$0xff]   ;;  %v1750_v16 = vld [vmem:[#allocation5 + $0x304] ss:$20 sps:$4 sm:$0xff]   ;;  %v1748_v18 = vld [vmem:[#allocation5 + $0x300] ss:$20 sps:$4 sm:$0xff]  }
  0x41   :  { %1123 = vmatprep.subr.bf16.mxu0 %v1671_v28  ;;  %1205 = vmatprep.subr.bf16.mxu1 %v1673_v29  ;;  %v1745_v17 = vld [vmem:[#allocation5 + $0x2f8] ss:$20 sps:$4 sm:$0xff]   ;;  %v1751_v21 = vld [vmem:[#allocation5 + $0x320] ss:$20 sps:$4 sm:$0xff]   ;;  %v1754_v22 = vld [vmem:[#allocation5 + $0x328] ss:$20 sps:$4 sm:$0xff]  }
  0x42   :  { %v1753_v19 = vld [vmem:[#allocation5 + $0x324] ss:$20 sps:$4 sm:$0xff]   ;;  %v1756_v20 = vld [vmem:[#allocation5 + $0x32c] ss:$20 sps:$4 sm:$0xff]   ;;  %v1762_v24 = vld [vmem:[#allocation5 + $0x354] ss:$20 sps:$4 sm:$0xff]  }
  0x43   :  { %v1759_v23 = vld [vmem:[#allocation5 + $0x34c] ss:$20 sps:$4 sm:$0xff]   ;;  %v1757_v25 = vld [vmem:[#allocation5 + $0x348] ss:$20 sps:$4 sm:$0xff]   ;;  %v1760_v26 = vld [vmem:[#allocation5 + $0x350] ss:$20 sps:$4 sm:$0xff]  }
  0x44   :  { %1124 = vmatpush1.bf16.msra.mxu0 %v1675_v30  ;;  %1206 = vmatpush1.bf16.msra.mxu1 %v1676_v31  ;;  %v1765_v27 = vld [vmem:[#allocation5 + $0x374] ss:$20 sps:$4 sm:$0xff]   ;;  %v1768_v28 = vld [vmem:[#allocation5 + $0x37c] ss:$20 sps:$4 sm:$0xff]  }
  0x45   :  { %1125 = vmatprep.subr.bf16.mxu0 %v1677_v32  ;;  %1207 = vmatprep.subr.bf16.mxu1 %v1679_v33  ;;  %v2003_v29 = vld [vmem:[#allocation2 + $0x8] sm:$0xff]  ;;  %v1763_v30 = vld [vmem:[#allocation5 + $0x370] ss:$20 sps:$4 sm:$0xff]  }
  0x46   :  { %v2007_v31 = vcombine.high %v2003_v29, %v2003_v29  ;;  %v1766_v32 = vld [vmem:[#allocation5 + $0x378] ss:$20 sps:$4 sm:$0xff]   ;;  %v1771_v33 = vld [vmem:[#allocation5 + $0x39c] ss:$20 sps:$4 sm:$0xff]  }
  0x47   :  { %v1792_v46 = vld [vmem:[#allocation5 + $0x41c] ss:$20 sps:$4 sm:$0xff]  }
  0x48   :  { %1126 = vmatpush1.bf16.msra.mxu0 %v1681_v34  ;;  %1208 = vmatpush1.bf16.msra.mxu1 %v1682_v35  ;;  %v1774_v34 = vld [vmem:[#allocation5 + $0x3a4] ss:$20 sps:$4 sm:$0xff]  }
  0x49   :  { %1127 = vmatprep.subr.bf16.mxu0 %v1683_v36  ;;  %1209 = vmatprep.subr.bf16.mxu1 %v1685_v37  ;;  %v1769_v35 = vld [vmem:[#allocation5 + $0x398] ss:$20 sps:$4 sm:$0xff]   ;;  %v1772_v36 = vld [vmem:[#allocation5 + $0x3a0] ss:$20 sps:$4 sm:$0xff]  }
  0x4a   :  { %v1777_v37 = vld [vmem:[#allocation5 + $0x3c4] ss:$20 sps:$4 sm:$0xff]  }
  0x4c   :  { %1128 = vmatpush1.bf16.msra.mxu0 %v1687_v38  ;;  %1210 = vmatpush1.bf16.msra.mxu1 %v1688_v39  ;;  %v1780_v38 = vld [vmem:[#allocation5 + $0x3cc] ss:$20 sps:$4 sm:$0xff]  }
  0x4d   :  { %1129 = vmatprep.subr.bf16.mxu0 %v1689_v40  ;;  %1211 = vmatprep.subr.bf16.mxu1 %v1691_v41  ;;  %v1775_v39 = vld [vmem:[#allocation5 + $0x3c0] ss:$20 sps:$4 sm:$0xff]   ;;  %v1778_v40 = vld [vmem:[#allocation5 + $0x3c8] ss:$20 sps:$4 sm:$0xff]  }
  0x4e   :  { %v1783_v41 = vld [vmem:[#allocation5 + $0x3ec] ss:$20 sps:$4 sm:$0xff]  }
  0x50   :  { %1130 = vmatpush1.bf16.msra.mxu0 %v1693_v42  ;;  %1212 = vmatpush1.bf16.msra.mxu1 %v1694_v43  ;;  %v1786_v42 = vld [vmem:[#allocation5 + $0x3f4] ss:$20 sps:$4 sm:$0xff]  }
  0x51   :  { %1131 = vmatprep.subr.bf16.mxu0 %v1695_v44  ;;  %1213 = vmatprep.subr.bf16.mxu1 %v1697_v45  ;;  %v1781_v43 = vld [vmem:[#allocation5 + $0x3e8] ss:$20 sps:$4 sm:$0xff]   ;;  %v1784_v44 = vld [vmem:[#allocation5 + $0x3f0] ss:$20 sps:$4 sm:$0xff]  }
  0x52   :  { %v1789_v45 = vld [vmem:[#allocation5 + $0x414] ss:$20 sps:$4 sm:$0xff]  }
  0x54   :  { %1132 = vmatpush1.bf16.msra.mxu0 %v1699_v47  ;;  %1214 = vmatpush1.bf16.msra.mxu1 %v1700_v49  ;;  %v1787_v47 = vld [vmem:[#allocation5 + $0x410] ss:$20 sps:$4 sm:$0xff]   ;;  %v1790_v49 = vld [vmem:[#allocation5 + $0x418] ss:$20 sps:$4 sm:$0xff]  }
  0x55   :  { %1133 = vmatprep.subr.bf16.mxu0 %v1701_v50  ;;  %1215 = vmatprep.subr.bf16.mxu1 %v1703_v51  ;;  %v1795_v50 = vld [vmem:[#allocation5 + $0x43c] ss:$20 sps:$4 sm:$0xff]   ;;  %v1798_v51 = vld [vmem:[#allocation5 + $0x444] ss:$20 sps:$4 sm:$0xff]  }
  0x58   :  { %1134 = vmatpush1.bf16.msra.mxu0 %v1705_v52  ;;  %1216 = vmatpush1.bf16.msra.mxu1 %v1706_v53  ;;  %v1793_v52 = vld [vmem:[#allocation5 + $0x438] ss:$20 sps:$4 sm:$0xff]   ;;  %v1796_v53 = vld [vmem:[#allocation5 + $0x440] ss:$20 sps:$4 sm:$0xff]  }
  0x59   :  { %1135 = vmatprep.subr.bf16.mxu0 %v1707_v54  ;;  %1217 = vmatprep.subr.bf16.mxu1 %v1709_v55  ;;  %v1801_v54 = vld [vmem:[#allocation5 + $0x464] ss:$20 sps:$4 sm:$0xff]   ;;  %v1804_v55 = vld [vmem:[#allocation5 + $0x46c] ss:$20 sps:$4 sm:$0xff]  }
  0x5c   :  { %1136 = vmatpush1.bf16.msra.mxu0 %v1711_v56  ;;  %1218 = vmatpush1.bf16.msra.mxu1 %v1712_v57  ;;  %v1799_v56 = vld [vmem:[#allocation5 + $0x460] ss:$20 sps:$4 sm:$0xff]   ;;  %v1802_v57 = vld [vmem:[#allocation5 + $0x468] ss:$20 sps:$4 sm:$0xff]  }
  0x5d   :  { %1137 = vmatprep.subr.bf16.mxu0 %v1713_v58  ;;  %1219 = vmatprep.subr.bf16.mxu1 %v1715_v59  ;;  %v1807_v58 = vld [vmem:[#allocation5 + $0x48c] ss:$20 sps:$4 sm:$0xff]   ;;  %v1810_v59 = vld [vmem:[#allocation5 + $0x494] ss:$20 sps:$4 sm:$0xff]  }
  0x60   :  { %1138 = vmatpush1.bf16.msra.mxu0 %v1717_v60  ;;  %1220 = vmatpush1.bf16.msra.mxu1 %v1718_v61  ;;  %v1805_v60 = vld [vmem:[#allocation5 + $0x488] ss:$20 sps:$4 sm:$0xff]   ;;  %v1808_v61 = vld [vmem:[#allocation5 + $0x490] ss:$20 sps:$4 sm:$0xff]  }
  0x61   :  { %1139 = vmatprep.subr.bf16.mxu0 %v1719_v62  ;;  %1221 = vmatprep.subr.bf16.mxu1 %v1721_v63  ;;  %v1813_v62 = vld [vmem:[#allocation5 + $0x4b4] ss:$20 sps:$4 sm:$0xff]   ;;  %v1816_v63 = vld [vmem:[#allocation5 + $0x4bc] ss:$20 sps:$4 sm:$0xff]  }
  0x64   :  { %1140 = vmatpush1.bf16.msra.mxu0 %v1723_v0  ;;  %1222 = vmatpush1.bf16.msra.mxu1 %v1724_v1  ;;  %v1811_v0 = vld [vmem:[#allocation5 + $0x4b0] ss:$20 sps:$4 sm:$0xff]   ;;  %v1814_v1 = vld [vmem:[#allocation5 + $0x4b8] ss:$20 sps:$4 sm:$0xff]  }
  0x65   :  { %1150 = vmatprep.subr.bf16.mxu0 %v1728_v2  ;;  %1232 = vmatprep.subr.bf16.mxu1 %v1731_v3  ;;  %v1819_v2 = vld [vmem:[#allocation5 + $0x4dc] ss:$20 sps:$4 sm:$0xff]   ;;  %v1822_v3 = vld [vmem:[#allocation5 + $0x4e4] ss:$20 sps:$4 sm:$0xff]  }
  0x67   :  { %1142 = vmatmul.mubr.bf16.vlgmr.msra.gmra.mrb[0].mxu0 %v1999_v5  ;;  %1224 = vmatmul.mubr.bf16.vlgmr.msra.gmra.mrb[0].mxu1 %v1999_v5 }
  0x68   :  { %1151 = vmatpush1.bf16.msra.mxu0 %v1726_v4  ;;  %1233 = vmatpush1.bf16.msra.mxu1 %v1729_v6  ;;  %v1817_v4 = vld [vmem:[#allocation5 + $0x4d8] ss:$20 sps:$4 sm:$0xff]   ;;  %v1820_v6 = vld [vmem:[#allocation5 + $0x4e0] ss:$20 sps:$4 sm:$0xff]  }
  0x69   :  { %1152 = vmatprep.subr.bf16.mxu0 %v1735_v7  ;;  %1234 = vmatprep.subr.bf16.mxu1 %v1738_v8  ;;  %v1825_v7 = vld [vmem:[#allocation5 + $0x150] ss:$20 sps:$4 sm:$0xff]  }
  0x6a   :  { %1182 = vmatprep.mubr.bf16.mxu0 %v2007_v31  ;;  %1264 = vmatprep.mubr.bf16.mxu1 %v2007_v31  ;;  %v1826_v8 = vld [vmem:[#allocation5 + $0x3d0] ss:$20 sps:$4 sm:$0xff]  }
  0x6c   :  { %1153 = vmatpush1.bf16.msra.mxu0 %v1733_v9  ;;  %1235 = vmatpush1.bf16.msra.mxu1 %v1736_v10  ;;  %v2013_v9 = vcombine.low %v2003_v29, %v2003_v29  ;;  %v1827_v10 = vld [vmem:[#allocation5 + $0x10] ss:$20 sps:$4 sm:$0xff]   ;;  %v1847_v29 = vld [vmem:[#allocation5 + $0xd8] ss:$20 sps:$4 sm:$0xff]  }
  0x6d   :  { %1154 = vmatprep.subr.bf16.mxu0 %v1741_v11  ;;  %1236 = vmatprep.subr.bf16.mxu1 %v1744_v12  ;;  %v1828_v11 = vld [vmem:[#allocation5 + $0x290] ss:$20 sps:$4 sm:$0xff]   ;;  %v1829_v12 = vld [vmem:[#allocation5 + $0x178] ss:$20 sps:$4 sm:$0xff]  }
  0x70   :  { %1155 = vmatpush1.bf16.msra.mxu0 %v1739_v13  ;;  %1237 = vmatpush1.bf16.msra.mxu1 %v1742_v14  ;;  %v1830_v13 = vld [vmem:[#allocation5 + $0x3f8] ss:$20 sps:$4 sm:$0xff]  }
  0x71   :  { %1156 = vmatprep.subr.bf16.mxu0 %v1747_v15  ;;  %1238 = vmatprep.subr.bf16.mxu1 %v1750_v16  ;;  %v1831_v14 = vld [vmem:[#allocation5 + $0x38] ss:$20 sps:$4 sm:$0xff]   ;;  %v1833_v16 = vld [vmem:[#allocation5 + $0x1a0] ss:$20 sps:$4 sm:$0xff]  }
  0x72   :  { %v1832_v15 = vld [vmem:[#allocation5 + $0x2b8] ss:$20 sps:$4 sm:$0xff]  }
  0x74   :  { %1157 = vmatpush1.bf16.msra.mxu0 %v1745_v17  ;;  %1239 = vmatpush1.bf16.msra.mxu1 %v1748_v18  ;;  %v1834_v17 = vld [vmem:[#allocation5 + $0x420] ss:$20 sps:$4 sm:$0xff]  }
  0x75   :  { %1158 = vmatprep.subr.bf16.mxu0 %v1753_v19  ;;  %1240 = vmatprep.subr.bf16.mxu1 %v1756_v20  ;;  %v1835_v18 = vld [vmem:[#allocation5 + $0x60] ss:$20 sps:$4 sm:$0xff]   ;;  %v1837_v20 = vld [vmem:[#allocation5 + $0x1c8] ss:$20 sps:$4 sm:$0xff]  }
  0x76   :  { %v1836_v19 = vld [vmem:[#allocation5 + $0x2e0] ss:$20 sps:$4 sm:$0xff]  }
  0x78   :  { %1159 = vmatpush1.bf16.msra.mxu0 %v1751_v21  ;;  %1241 = vmatpush1.bf16.msra.mxu1 %v1754_v22  ;;  %v1838_v21 = vld [vmem:[#allocation5 + $0x448] ss:$20 sps:$4 sm:$0xff]  }
  0x79   :  { %1160 = vmatprep.subr.bf16.mxu0 %v1759_v23  ;;  %1242 = vmatprep.subr.bf16.mxu1 %v1762_v24  ;;  %v1839_v22 = vld [vmem:[#allocation5 + $0x88] ss:$20 sps:$4 sm:$0xff]   ;;  %v1841_v24 = vld [vmem:[#allocation5 + $0x1f0] ss:$20 sps:$4 sm:$0xff]  }
  0x7a   :  { %v1840_v23 = vld [vmem:[#allocation5 + $0x308] ss:$20 sps:$4 sm:$0xff]  }
  0x7c   :  { %1161 = vmatpush1.bf16.msra.mxu0 %v1757_v25  ;;  %1243 = vmatpush1.bf16.msra.mxu1 %v1760_v26  ;;  %v1842_v25 = vld [vmem:[#allocation5 + $0x470] ss:$20 sps:$4 sm:$0xff]  }
  0x7d   :  { %1162 = vmatprep.subr.bf16.mxu0 %v1765_v27  ;;  %1244 = vmatprep.subr.bf16.mxu1 %v1768_v28  ;;  %v1844_v26 = vld [vmem:[#allocation5 + $0x330] ss:$20 sps:$4 sm:$0xff]   ;;  %v1845_v27 = vld [vmem:[#allocation5 + $0x218] ss:$20 sps:$4 sm:$0xff]  }
  0x7e   :  { %v1846_v28 = vld [vmem:[#allocation5 + $0x498] ss:$20 sps:$4 sm:$0xff]  }
  0x80   :  { %1163 = vmatpush1.bf16.msra.mxu0 %v1763_v30  ;;  %1245 = vmatpush1.bf16.msra.mxu1 %v1766_v32  ;;  %v1848_v30 = vld [vmem:[#allocation5 + $0x358] ss:$20 sps:$4 sm:$0xff]   ;;  %v1850_v32 = vld [vmem:[#allocation5 + $0x4c0] ss:$20 sps:$4 sm:$0xff]  }
  0x81   :  { %1164 = vmatprep.subr.bf16.mxu0 %v1771_v33  ;;  %1246 = vmatprep.subr.bf16.mxu1 %v1774_v34  ;;  %v1851_v33 = vld [vmem:[#allocation5 + $0x100] ss:$20 sps:$4 sm:$0xff]  }
  0x82   :  { %v1852_v34 = vld [vmem:[#allocation5 + $0x380] ss:$20 sps:$4 sm:$0xff]  }
  0x84   :  { %1165 = vmatpush1.bf16.msra.mxu0 %v1769_v35  ;;  %1247 = vmatpush1.bf16.msra.mxu1 %v1772_v36  ;;  %v1853_v35 = vld [vmem:[#allocation5 + $0x268] ss:$20 sps:$4 sm:$0xff]  }
  0x85   :  { %1166 = vmatprep.subr.bf16.mxu0 %v1777_v37  ;;  %1248 = vmatprep.subr.bf16.mxu1 %v1780_v38  ;;  %v1854_v36 = vld [vmem:[#allocation5 + $0x4e8] ss:$20 sps:$4 sm:$0xff]  }
  0x86   :  { %v1855_v37 = vld [vmem:[#allocation5 + $0x128] ss:$20 sps:$4 sm:$0xff]  }
  0x87   :  { %v1856_v38 = vld [vmem:[#allocation5 + $0x3a8] ss:$20 sps:$4 sm:$0xff]  }
  0x88   :  { %1167 = vmatpush1.bf16.msra.mxu0 %v1775_v39  ;;  %1249 = vmatpush1.bf16.msra.mxu1 %v1778_v40  ;;  %v238_v39 = vlaneseq }
  0x89   :  { %1168 = vmatprep.subr.bf16.mxu0 %v1783_v41  ;;  %1250 = vmatprep.subr.bf16.mxu1 %v1786_v42 }
  0x8a   :  { %v239_v40 = vshrl.u32 %v238_v39, 7 }
  0x8c   :  { %1169 = vmatpush1.bf16.msra.mxu0 %v1781_v43  ;;  %1251 = vmatpush1.bf16.msra.mxu1 %v1784_v44  ;;  %v240_v41 = vsub.s32 0, %v239_v40  ;;  %v248_v42 = vsub.s32 2, %v239_v40  ;;  %v236_v43 = vld [vmem:[%s2038_s2] sm:$0x1f]  ;;  %v244_v44 = vsub.s32 1, %v239_v40  ;;  %s1943_s2 = smov [#allocation7]  }
  0x8d   :  { %1170 = vmatprep.subr.bf16.mxu0 %v1789_v45  ;;  %1252 = vmatprep.subr.bf16.mxu1 %v1792_v46  ;;  %v252_v45 = vsub.s32 3, %v239_v40  ;;  %s1394_s11 = sshll.u32 %s1943_s2, 4  ;;  %s1395_s11 = int_to_ptr.vmem [resolvable:$true] %s1394_s11 }
  0x8e   :  { %v241_v46 = vrot.slane %v236_v43, %v240_v41  ;;  %s1911_s12 = scalar_lea.vmem %s1395_s11, 128  ;;  %p1916_p3 = scmp.lt.s32.totalorder %s1395_s11, %s1395_s11 }
  0x8f   :  { %p1912_p2 = scmp.ne.s32.totalorder %s1395_s11, %s1911_s12  ;;  %p1917_p4 = scmp.lt.s32.totalorder %s1911_s12, %s1911_s12 }
  0x90   :  { %1171 = vmatpush1.bf16.msra.mxu0 %v1787_v47  ;;  %1253 = vmatpush1.bf16.msra.mxu1 %v1790_v49  ;;  %v249_v47 = vrot.slane %v236_v43, %v248_v42  ;;  %v245_v49 = vrot.slane %v236_v43, %v244_v44 }
  0x91   :  { %1172 = vmatprep.subr.bf16.mxu0 %v1795_v50  ;;  %1254 = vmatprep.subr.bf16.mxu1 %v1798_v51  ;;  %v253_v50 = vrot.slane %v236_v43, %v252_v45  ;;  %p1918_p5 = por %p1917_p4, %p1916_p3 }
  0x93   :  { %p1919_p6 = pnand %p1918_p5, %p1912_p2 }
  0x94   :  { %1173 = vmatpush1.bf16.msra.mxu0 %v1793_v52  ;;  %1255 = vmatpush1.bf16.msra.mxu1 %v1796_v53 }
  0x95   :  { %1174 = vmatprep.subr.bf16.mxu0 %v1801_v54  ;;  %1256 = vmatprep.subr.bf16.mxu1 %v1804_v55 }
  0x98   :  { %1175 = vmatpush1.bf16.msra.mxu0 %v1799_v56  ;;  %1257 = vmatpush1.bf16.msra.mxu1 %v1802_v57 }
  0x99   :  { %1176 = vmatprep.subr.bf16.mxu0 %v1807_v58  ;;  %1258 = vmatprep.subr.bf16.mxu1 %v1810_v59 }
  0x9c   :  { %1177 = vmatpush1.bf16.msra.mxu0 %v1805_v60  ;;  %1259 = vmatpush1.bf16.msra.mxu1 %v1808_v61 }
  0x9d   :  { %1178 = vmatprep.subr.bf16.mxu0 %v1813_v62  ;;  %1260 = vmatprep.subr.bf16.mxu1 %v1816_v63 }
  0xa0   :  { %1179 = vmatpush1.bf16.msra.mxu0 %v1811_v0  ;;  %1261 = vmatpush1.bf16.msra.mxu1 %v1814_v1 }
  0xa1   :  { %1180 = vmatprep.subr.bf16.mxu0 %v1819_v2  ;;  %1262 = vmatprep.subr.bf16.mxu1 %v1822_v3  ;;  %v256_v2 = vsub.s32 4, %v239_v40 }
  0xa4   :  { %1181 = vmatpush1.bf16.msra.mxu0 %v1817_v4  ;;  %1263 = vmatpush1.bf16.msra.mxu1 %v1820_v6  ;;  %v257_v6 = vrot.slane %v236_v43, %v256_v2 }
  0xa5   :  { %1568 = vmatprep.subr.bf16.mxu0 %v1825_v7  ;;  %1590 = vmatprep.subr.bf16.mxu1 %v1826_v8 }
  0xa7   :  { %1183 = vmatmul.mubr.bf16.vlgmr.msra.gmra.mrb[0].mxu0 %v2013_v9  ;;  %1265 = vmatmul.mubr.bf16.vlgmr.msra.gmra.mrb[0].mxu1 %v2013_v9 }
  0xa8   :  { %1569 = vmatpush3.bf16.msra.mxu0 %v1827_v10  ;;  %1591 = vmatpush3.bf16.msra.mxu1 %v1828_v11 }
  0xa9   :  { %1570 = vmatprep.subr.bf16.mxu0 %v1829_v12  ;;  %1592 = vmatprep.subr.bf16.mxu1 %v1830_v13 }
  0xaa   :  { %1305 = vmatprep.mubr.bf16.mxu0 %v1995_v48  ;;  %1345 = vmatprep.mubr.bf16.mxu1 %v2007_v31  ;;  %v1843_v48 = vld [vmem:[#allocation5 + $0xb0] ss:$20 sps:$4 sm:$0xff]   ;;  %v1849_v31 = vld [vmem:[#allocation5 + $0x240] ss:$20 sps:$4 sm:$0xff]  }
  0xac   :  { %1571 = vmatpush3.bf16.msra.mxu0 %v1831_v14  ;;  %1593 = vmatpush3.bf16.msra.mxu1 %v1832_v15 }
  0xad   :  { %1572 = vmatprep.subr.bf16.mxu0 %v1833_v16  ;;  %1594 = vmatprep.subr.bf16.mxu1 %v1834_v17 }
  0xb0   :  { %1573 = vmatpush3.bf16.msra.mxu0 %v1835_v18  ;;  %1595 = vmatpush3.bf16.msra.mxu1 %v1836_v19 }
  0xb1   :  { %1574 = vmatprep.subr.bf16.mxu0 %v1837_v20  ;;  %1596 = vmatprep.subr.bf16.mxu1 %v1838_v21 }
  0xb4   :  { %1575 = vmatpush3.bf16.msra.mxu0 %v1839_v22  ;;  %1597 = vmatpush3.bf16.msra.mxu1 %v1840_v23 }
  0xb5   :  { %1576 = vmatprep.subr.bf16.mxu0 %v1841_v24  ;;  %1598 = vmatprep.subr.bf16.mxu1 %v1842_v25 }
  0xb8   :  { %1577 = vmatpush3.bf16.msra.mxu0 %v1843_v48  ;;  %1599 = vmatpush3.bf16.msra.mxu1 %v1844_v26 }
  0xb9   :  { %1578 = vmatprep.subr.bf16.mxu0 %v1845_v27  ;;  %1600 = vmatprep.subr.bf16.mxu1 %v1846_v28 }
  0xbc   :  { %1579 = vmatpush3.bf16.msra.mxu0 %v1847_v29  ;;  %1601 = vmatpush3.bf16.msra.mxu1 %v1848_v30 }
  0xbd   :  { %1580 = vmatprep.subr.bf16.mxu0 %v1849_v31  ;;  %1602 = vmatprep.subr.bf16.mxu1 %v1850_v32 }
  0xc0   :  { %1581 = vmatpush3.bf16.msra.mxu0 %v1851_v33  ;;  %1603 = vmatpush3.bf16.msra.mxu1 %v1852_v34 }
  0xc1   :  { %1582 = vmatprep.subr.bf16.mxu0 %v1853_v35  ;;  %1604 = vmatprep.subr.bf16.mxu1 %v1854_v36 }
  0xc4   :  { %1583 = vmatpush3.bf16.msra.mxu0 %v1855_v37  ;;  %1605 = vmatpush3.bf16.msra.mxu1 %v1856_v38 }
  0xc7   :  { %1306 = vmatmul.mubr.bf16.vlgmr.msra.gmra.mrb[4].mxu0 %v1999_v5  ;;  %1346 = vmatmul.mubr.bf16.vlgmr.msra.gmra.mrb[4].mxu1 %v2013_v9 }
 0x17a   :  { %v1184_v51 = vpop.f32.mrb[0].mxu0  ;;  %v1266_v52 = vpop.f32.mrb[0].mxu1 }
 0x17b   :  { %v1612_v53 = vadd.f32 %v1184_v51, %v241_v46  ;;  %v1614_v5 = vadd.f32 %v1266_v52, %v249_v47  ;;  %v1186_v54 = vpop.f32.mrb[1].mxu0  ;;  %v1268_v55 = vpop.f32.mrb[1].mxu1 }
 0x17c   :  { %v1188_v56 = vpop.f32.mrb[2].mxu0  ;;  %v1270_v57 = vpop.f32.mrb[2].mxu1  ;;  %v1613_v58 = vadd.f32 %v1186_v54, %v245_v49  ;;  %v1615_v59 = vadd.f32 %v1268_v55, %v253_v50 }
 0x17d   :  { %v1189_v60 = vpop.f32.mrb[3].mxu0  ;;  %v1271_v61 = vpop.f32.mrb[3].mxu1  ;;  %v1366_v62 = vmul.f32 %v1614_v5, %v1614_v5  ;;  %v1353_v63 = vmul.f32 %v1612_v53, %v1612_v53 }
 0x17e   :  { %v1373_v0 = vmul.f32 %v1615_v59, %v1615_v59  ;;  %v1359_v1 = vmul.f32 %v1613_v58, %v1613_v58 }
 0x17f   :  { %1367 = vadd.xlane.f32.xlu1 %v1366_v62  ;;  %1354 = vadd.xlane.f32.xlu0 %v1353_v63 }
 0x183   :  { %1374 = vadd.xlane.f32.xlu1 %v1373_v0  ;;  %1360 = vadd.xlane.f32.xlu0 %v1359_v1 }
 0x19a   :  { %v1584_v3 = vpop.f32.mrb[4].mxu0  ;;  %v1606_v4 = vpop.f32.mrb[4].mxu1 }
 0x19b   :  { %v1585_v7 = vpop.f32.mrb[5].mxu0  ;;  %v1607_v8 = vpop.f32.mrb[5].mxu1 }
 0x19c   :  { %v1586_v9 = vadd.f32 %v1585_v7, %v1584_v3  ;;  %v1608_v10 = vadd.f32 %v1607_v8, %v1606_v4  ;;  %v1587_v11 = vpop.f32.mrb[6].mxu0  ;;  %v1609_v12 = vpop.f32.mrb[6].mxu1 }
 0x19d   :  { %v1588_v13 = vpop.f32.mrb[7].mxu0  ;;  %v1610_v14 = vpop.f32.mrb[7].mxu1 }
 0x19e   :  { %v1308_v15 = vadd.f32 %v1586_v9, %v257_v6 }
 0x1a0   :  { %v1348_v16 = vadd.f32 %v1608_v10, %v1308_v15 }
 0x1a2   :  { %v1380_v17 = vmul.f32 %v1348_v16, %v1348_v16 }
 0x1a4   :  { %1381 = vadd.xlane.f32.xlu0 %v1380_v17 }
 0x20c   :  { %v1355_v18 = vpop.xlane.xlu0 %1354  ;;  %v1368_v21 = vpop.xlane.xlu1 %1367 }
 0x20d   :  { %v1356_v22 = vmax.f32 %v1355_v18, 1e-24  ;;  %v1369_v23 = vmax.f32 %v1368_v21, 1e-24 }
 0x210   :  { %v1361_v19 = vpop.xlane.xlu0 %1360  ;;  %v1375_v24 = vpop.xlane.xlu1 %1374 }
 0x211   :  { %v1362_v20 = vmax.f32 %v1361_v19, 1e-24  ;;  %v1376_v25 = vmax.f32 %v1375_v24, 1e-24 }
 0x213   :  { %1857 = vrsqrt.f32 %v1362_v20 }
 0x214   :  { %1859 = vrsqrt.f32 %v1356_v22 }
 0x215   :  { %1861 = vrsqrt.f32 %v1369_v23 }
 0x216   :  { %1863 = vrsqrt.f32 %v1376_v25 }
 0x21d   :  { %v1858_v48 = vpop.eup %1857 }
 0x21e   :  { %v1860_v27 = vpop.eup %1859  ;;  %v1364_v29 = vmul.f32 %v1858_v48, %v1613_v58 }
 0x21f   :  { %v1358_v30 = vmul.f32 %v1860_v27, %v1612_v53  ;;  %v1862_v31 = vpop.eup %1861 }
 0x220   :  { %v1371_v33 = vmul.f32 %v1862_v31, %v1614_v5  ;;  %v1864_v34 = vpop.eup %1863 }
 0x221   :  { %v1365_v32 = vadd.f32 %v1364_v29, %v1358_v30  ;;  %v1378_v36 = vmul.f32 %v1864_v34, %v1615_v59 }
 0x223   :  { %v1372_v35 = vadd.f32 %v1371_v33, %v1365_v32 }
 0x225   :  { %v1379_v38 = vadd.f32 %v1378_v36, %v1372_v35 }
 0x231   :  { %v1382_v26 = vpop.xlane.xlu0 %1381 }
 0x232   :  { %v1383_v28 = vmax.f32 %v1382_v26, 1e-24 }
 0x234   :  { %1865 = vrsqrt.f32 %v1383_v28 }
 0x23e   :  { %v1866_v37 = vpop.eup %1865 }
 0x23f   :  { %v1385_v39 = vmul.f32 %v1866_v37, %v1348_v16 }
 0x241   :  { %v1386_v40 = vadd.f32 %v1385_v39, %v1379_v38 }
 0x243   :  { %1387 = vst [vmem:[#allocation7] sm:$0xff] %v1386_v40 }
 0x244   :  { %1922 = shalt.err (!%p1919_p6)
}
 0x245   :  { %s1923_s15 = scalar_lea.hbm %s2039_s3, 128 }
 0x246   :  { %p1924_p7 = scmp.ne.s32.totalorder %s2039_s3, %s1923_s15  ;;  %p1927_p8 = scmp.lt.u32.totalorder %s1923_s15, %s2039_s3 }
 0x248   :  { %p1929_p9 = pnand %p1927_p8, %p1924_p7 }
 0x24a   :  { %1932 = shalt.err (!%p1929_p9)
}
 0x24b   :  { %1397 = dma.vmem_to_hbm [thread:$0]  %s1395_s11, 128, %s2039_s3, [#allocation4]  }
 0x24c   :  { %1937 = dma.done.wait [#allocation4], 128  }
 0x24d   :  { %1938 = vsyncadd [#allocation4], 4294967168 }
 0x24e   :  { %1401 = vsyncpa [#allocation3], 1 }
 0x24f   :  { %1402 = vsyncpa [#allocation6], 1 }
 0x250   :  { %1403 = vsyncpa [#allocation4], 1 }

</bundles_post_ra>
